<compile_context>
chip_gen: v5e
topology: v5e:2x2
jax: 0.10.0
libtpu: 0.0.40
codegen_flags: <defaults>
</compile_context>

<pallas_src>
import functools

import jax
import jax.numpy as jnp
from jax.experimental import pallas as pl
from jax.experimental.pallas import tpu as pltpu

EPS = 1e-5                     # nn.BatchNorm2d default eps
MXU_DTYPE = jnp.bfloat16       # MXU operand / inter-stage activation dtype


# ------------------------------ sizing helpers ------------------------------ #
def _vmem_limit_bytes():
    """Generation-aware scoped-VMEM limit: ~75% of physical VMEM."""
    cap = 64 * 1024 * 1024                     # safe fallback (v7x physical)
    try:
        info = pltpu.get_tpu_info()
        cap = int(getattr(info, "vmem_capacity_bytes", cap))
    except Exception:
        pass
    return int(cap * 3 // 4)


def _pick_tile_n(n, bytes_per_unit, budget):
    """Largest divisor of n (capped) whose double-buffered working set fits in
    ~half the VMEM budget, while leaving >= 2 grid steps for pipelining and
    dual-TC / megacore sharding whenever n >= 2."""
    cap = max(1, min(8, n // 2))
    best = 1
    for t in range(1, cap + 1):
        if n % t == 0 and 2 * t * bytes_per_unit <= budget // 2:
            best = t
    return best


def _bn_affine(s1, s2, gamma, beta, m_rows):
    """Fold batch statistics (sum, sum-of-squares) into a per-channel affine
    a*x + c  ==  (x - mean) * rsqrt(var + eps) * gamma + beta."""
    mean = s1 / m_rows
    var = jnp.maximum(s2 / m_rows - mean * mean, 0.0)
    a = gamma * jax.lax.rsqrt(var + EPS)
    c = beta - mean * a
    return (a.reshape(1, -1).astype(jnp.float32),
            c.reshape(1, -1).astype(jnp.float32))


# ------------- kernel A: 3x3 stride-1 conv (+input affine) + stats ---------- #
def _conv3x3_s1_kernel(*refs, h, w, has_in_affine):
    """3x3 stride-1 conv on an NHWC batch tile.

    Optionally applies a per-channel affine (folded BN of the previous layer)
    + ReLU to the input before the conv (the conv2 path).  Emits the raw
    (pre-BN) conv output in bf16 plus per-tile channel sum / sum-of-squares.
    Spatial zero-padding of the (normalized) input happens in a VMEM scratch.
    """
    if has_in_affine:
        x_ref, a_ref, c_ref, w_ref, y_ref, st_ref, pad_ref = refs
    else:
        x_ref, w_ref, y_ref, st_ref, pad_ref = refs
    tn, cin = x_ref.shape[0], x_ref.shape[-1]
    cout = w_ref.shape[-1]
    m = tn * h * w

    xv = x_ref[...].astype(jnp.float32)
    if has_in_affine:
        xv = jnp.maximum(xv * a_ref[...] + c_ref[...], 0.0)   # fused BN1+ReLU

    # In-kernel spatial padding: zero halo, write the tile into the interior.
    pad_ref[...] = jnp.zeros_like(pad_ref)
    pad_ref[:, 1:h + 1, 1:w + 1, :] = xv.astype(MXU_DTYPE)
    xp = pad_ref[...]

    # 9 shifted matmuls, one per 3x3 tap; K == real channel count (no
    # zero-padded contraction columns -> no wasted MXU cycles).
    acc = jnp.zeros((m, cout), jnp.float32)
    for t in range(9):
        ky, kx = t // 3, t % 3
        tap = xp[:, ky:ky + h, kx:kx + w, :].reshape(m, cin)
        acc = acc + jnp.dot(tap, w_ref[t], preferred_element_type=jnp.float32)

    # Per-tile BN partials (pass 1 of the two-pass BN; reduced in XLA).
    s1 = jnp.sum(acc, axis=0, keepdims=True)
    s2 = jnp.sum(acc * acc, axis=0, keepdims=True)
    st_ref[...] = jnp.concatenate([s1, s2], axis=0).reshape(1, 2, cout)
    y_ref[...] = acc.reshape(tn, h, w, cout).astype(y_ref.dtype)


def _conv3x3_s1(x_nhwc, w9, a_in, c_in, *, out_dtype, vlim):
    """x: (N,H,W,Cin) bf16; w9: (9,Cin,Cout) bf16; a_in/c_in: (1,Cin) f32 or
    None.  Returns (y (N,H,W,Cout) out_dtype, stats (tiles,2,Cout) f32)."""
    n, h, w, cin = x_nhwc.shape
    cout = w9.shape[-1]
    bytes_per_img = (h * w * cin * 2 + (h + 2) * (w + 2) * cin * 2
                     + h * w * cout * 2 + h * w * cout * 4)
    tile_n = _pick_tile_n(n, bytes_per_img, vlim)
    n_tiles = n // tile_n
    has_aff = a_in is not None

    kern = functools.partial(_conv3x3_s1_kernel, h=h, w=w,
                             has_in_affine=has_aff)
    in_specs = [pl.BlockSpec((tile_n, h, w, cin), lambda i: (i, 0, 0, 0))]
    args = [x_nhwc]
    if has_aff:
        in_specs += [pl.BlockSpec((1, cin), lambda i: (0, 0)),
                     pl.BlockSpec((1, cin), lambda i: (0, 0))]
        args += [a_in, c_in]
    # Weights: constant index_map -> VMEM-resident across all batch tiles.
    in_specs.append(pl.BlockSpec((9, cin, cout), lambda i: (0, 0, 0)))
    args.append(w9)

    return pl.pallas_call(
        kern,
        out_shape=(jax.ShapeDtypeStruct((n, h, w, cout), out_dtype),
                   jax.ShapeDtypeStruct((n_tiles, 2, cout), jnp.float32)),
        grid=(n_tiles,),
        in_specs=in_specs,
        out_specs=(pl.BlockSpec((tile_n, h, w, cout), lambda i: (i, 0, 0, 0)),
                   pl.BlockSpec((1, 2, cout), lambda i: (i, 0, 0))),
        scratch_shapes=[pltpu.VMEM((tile_n, h + 2, w + 2, cin), MXU_DTYPE)],
        compiler_params=pltpu.CompilerParams(
            dimension_semantics=("parallel",),
            vmem_limit_bytes=vlim),
    )(*args)


# ---- kernel B: strided conv1 (im2col patches) + fused 1x1 shortcut + stats -- #
def _conv1_proj_kernel(p_ref, w1_ref, ws_ref, y1_ref, ysc_ref, st_ref, *, cin):
    p = p_ref[...]                                              # (tm, 9*cin)
    cout = w1_ref.shape[-1]

    acc1 = jnp.dot(p, w1_ref[...], preferred_element_type=jnp.float32)
    # 1x1 strided shortcut conv: input is the centre (ky=kx=1) tap columns of
    # the same patch matrix, so x is read from HBM exactly once.
    accs = jnp.dot(p[:, 4 * cin:5 * cin], ws_ref[...],
                   preferred_element_type=jnp.float32)

    st = jnp.concatenate([
        jnp.sum(acc1, axis=0, keepdims=True),
        jnp.sum(acc1 * acc1, axis=0, keepdims=True),
        jnp.sum(accs, axis=0, keepdims=True),
        jnp.sum(accs * accs, axis=0, keepdims=True)], axis=0)
    st_ref[...] = st.reshape(1, 4, cout)
    y1_ref[...] = acc1.astype(y1_ref.dtype)
    ysc_ref[...] = accs.astype(ysc_ref.dtype)


def _conv1_proj(patches, w1, ws, *, rows_per_img, n_img, cin, vlim):
    m, k1 = patches.shape
    cout = w1.shape[-1]
    bytes_per_img = rows_per_img * (k1 * 2 + cout * (2 + 2 + 8))
    tile_imgs = _pick_tile_n(n_img, bytes_per_img, vlim)
    tile_m = tile_imgs * rows_per_img
    m_tiles = m // tile_m

    kern = functools.partial(_conv1_proj_kernel, cin=cin)
    return pl.pallas_call(
        kern,
        out_shape=(jax.ShapeDtypeStruct((m, cout), MXU_DTYPE),      # raw conv1
                   jax.ShapeDtypeStruct((m, cout), MXU_DTYPE),      # raw shortcut
                   jax.ShapeDtypeStruct((m_tiles, 4, cout), jnp.float32)),
        grid=(m_tiles,),
        in_specs=[pl.BlockSpec((tile_m, k1), lambda i: (i, 0)),
                  pl.BlockSpec((k1, cout), lambda i: (0, 0)),        # resident
                  pl.BlockSpec((cin, cout), lambda i: (0, 0))],      # resident
        out_specs=(pl.BlockSpec((tile_m, cout), lambda i: (i, 0)),
                   pl.BlockSpec((tile_m, cout), lambda i: (i, 0)),
                   pl.BlockSpec((1, 4, cout), lambda i: (i, 0, 0))),
        compiler_params=pltpu.CompilerParams(
            dimension_semantics=("parallel",),
            vmem_limit_bytes=vlim),
    )(patches, w1, ws)


# --------------- kernel C: BN2 + (shortcut BN) + residual + ReLU ------------ #
def _epilogue_kernel(*refs, has_sc_bn):
    if has_sc_bn:
        y_ref, r_ref, a2_ref, c2_ref, as_ref, cs_ref, o_ref = refs
    else:
        y_ref, r_ref, a2_ref, c2_ref, o_ref = refs
    y = y_ref[...].astype(jnp.float32) * a2_ref[...] + c2_ref[...]
    r = r_ref[...].astype(jnp.float32)
    if has_sc_bn:
        r = r * as_ref[...] + cs_ref[...]
    o_ref[...] = jnp.maximum(y + r, 0.0).astype(o_ref.dtype)


def _epilogue(y2, resid, a2, c2, a_sc, c_sc, *, rows_per_img, n_img, vlim):
    m, cout = y2.shape
    has_sc = a_sc is not None
    bytes_per_img = rows_per_img * cout * (2 + resid.dtype.itemsize + 4)
    tile_imgs = _pick_tile_n(n_img, bytes_per_img, vlim)
    tile_m = tile_imgs * rows_per_img
    m_tiles = m // tile_m

    kern = functools.partial(_epilogue_kernel, has_sc_bn=has_sc)
    in_specs = [pl.BlockSpec((tile_m, cout), lambda i: (i, 0)),
                pl.BlockSpec((tile_m, cout), lambda i: (i, 0)),
                pl.BlockSpec((1, cout), lambda i: (0, 0)),
                pl.BlockSpec((1, cout), lambda i: (0, 0))]
    args = [y2, resid, a2, c2]
    if has_sc:
        in_specs += [pl.BlockSpec((1, cout), lambda i: (0, 0)),
                     pl.BlockSpec((1, cout), lambda i: (0, 0))]
        args += [a_sc, c_sc]

    return pl.pallas_call(
        kern,
        out_shape=jax.ShapeDtypeStruct((m, cout), jnp.float32),
        grid=(m_tiles,),
        in_specs=in_specs,
        out_specs=pl.BlockSpec((tile_m, cout), lambda i: (i, 0)),
        compiler_params=pltpu.CompilerParams(
            dimension_semantics=("parallel",),
            vmem_limit_bytes=vlim),
    )(*args)


# ------------------------------- glue code --------------------------------- #
def _im2col(x_nhwc, kh, kw, stride, pad):
    """(N,H,W,C) -> patches (N*Ho*Wo, kh*kw*C).  Only used for the strided
    downsampling conv1 (small Cin; ~(9/stride^2)x traffic, not 9x)."""
    N, H, W, C = x_nhwc.shape
    xp = jnp.pad(x_nhwc, ((0, 0), (pad, pad), (pad, pad), (0, 0)))
    Ho = (H + 2 * pad - kh) // stride + 1
    Wo = (W + 2 * pad - kw) // stride + 1
    cols = []
    for ky in range(kh):
        for kx in range(kw):
            cols.append(xp[:, ky:ky + stride * (Ho - 1) + 1:stride,
                           kx:kx + stride * (Wo - 1) + 1:stride, :])
    patches = jnp.concatenate(cols, axis=-1)
    return patches.reshape(N * Ho * Wo, kh * kw * C), (N, Ho, Wo)


def basic_block_forward(x_nchw, params, stride):
    """Pallas implementation of BasicBlock.forward (training-mode BN)."""
    x = jnp.transpose(x_nchw, (0, 2, 3, 1)).astype(jnp.float32)      # NHWC
    n, h, w, cin = x.shape
    planes = params["w1"].shape[-1]
    vlim = _vmem_limit_bytes()

    has_proj = (stride != 1) or (cin != planes)
    if has_proj:
        ho = (h + 2 - 3) // stride + 1
        wo = (w + 2 - 3) // stride + 1
        patches, _ = _im2col(x, 3, 3, stride, 1)
        patches = patches.astype(MXU_DTYPE)
        w1 = params["w1"].reshape(9 * cin, planes).astype(MXU_DTYPE)
        ws = params["ws"].reshape(cin, planes).astype(MXU_DTYPE)
        y1_flat, ysc_flat, st = _conv1_proj(
            patches, w1, ws, rows_per_img=ho * wo, n_img=n, cin=cin, vlim=vlim)
        st = jnp.sum(st, axis=0)                                   # (4, planes)
        m_rows = n * ho * wo
        a1, c1 = _bn_affine(st[0], st[1], params["g1"], params["b1"], m_rows)
        a_sc, c_sc = _bn_affine(st[2], st[3], params["gs"], params["bs"], m_rows)
        y1 = y1_flat.reshape(n, ho, wo, planes)
        resid = ysc_flat                                   # raw bf16 shortcut
    else:
        ho, wo = h, w
        w1 = params["w1"].reshape(9, cin, planes).astype(MXU_DTYPE)
        y1, st = _conv3x3_s1(x.astype(MXU_DTYPE), w1, None, None,
                             out_dtype=MXU_DTYPE, vlim=vlim)
        st = jnp.sum(st, axis=0)                                   # (2, planes)
        m_rows = n * ho * wo
        a1, c1 = _bn_affine(st[0], st[1], params["g1"], params["b1"], m_rows)
        a_sc = c_sc = None
        resid = x.reshape(m_rows, planes)                  # identity, unpadded

    # conv2: BN1 + ReLU folded into the input load, zero-pad in-kernel,
    # 9 shifted matmuls, raw bf16 output + BN2 partial stats.
    w2 = params["w2"].reshape(9, planes, planes).astype(MXU_DTYPE)
    y2, st2 = _conv3x3_s1(y1, w2, a1, c1, out_dtype=MXU_DTYPE, vlim=vlim)
    st2 = jnp.sum(st2, axis=0)
    m_rows = n * ho * wo
    a2, c2 = _bn_affine(st2[0], st2[1], params["g2"], params["b2"], m_rows)

    out_flat = _epilogue(y2.reshape(m_rows, planes), resid, a2, c2, a_sc, c_sc,
                         rows_per_img=ho * wo, n_img=n, vlim=vlim)
    out = out_flat.reshape(n, ho, wo, planes)
    return jnp.transpose(out, (0, 3, 1, 2))                       # back to NCHW


# --------------------------- pure-JAX reference ----------------------------- #
def _ref_forward(x_nchw, params, stride):
    x = jnp.transpose(x_nchw, (0, 2, 3, 1)).astype(jnp.float32)

    def conv(v, wt, s, pad):
        return jax.lax.conv_general_dilated(
            v, wt, (s, s), [(pad, pad), (pad, pad)],
            dimension_numbers=("NHWC", "HWIO", "NHWC"))

    def bn(v, g, b):
        m = jnp.mean(v, axis=(0, 1, 2), keepdims=True)
        var = jnp.mean((v - m) ** 2, axis=(0, 1, 2), keepdims=True)
        return (v - m) * jax.lax.rsqrt(var + EPS) * g + b

    planes = params["w1"].shape[-1]
    out = jax.nn.relu(bn(conv(x, params["w1"], stride, 1), params["g1"], params["b1"]))
    out = bn(conv(out, params["w2"], 1, 1), params["g2"], params["b2"])
    if stride != 1 or x.shape[-1] != planes:
        sc = bn(conv(x, params["ws"], stride, 0), params["gs"], params["bs"])
    else:
        sc = x
    return jnp.transpose(jax.nn.relu(out + sc), (0, 3, 1, 2))


# ----------------------------------- main ----------------------------------- #
if __name__ == "__main__":
    def make_params(key, cin, planes):
        k1, k2, ks = jax.random.split(key, 3)
        return {
            "w1": 0.1 * jax.random.normal(k1, (3, 3, cin, planes), jnp.float32),
            "w2": 0.1 * jax.random.normal(k2, (3, 3, planes, planes), jnp.float32),
            "ws": 0.1 * jax.random.normal(ks, (1, 1, cin, planes), jnp.float32),
            "g1": 1.0 + 0.1 * jnp.arange(planes, dtype=jnp.float32),
            "b1": 0.05 * jnp.arange(planes, dtype=jnp.float32),
            "g2": 1.0 - 0.05 * jnp.arange(planes, dtype=jnp.float32),
            "b2": -0.03 * jnp.arange(planes, dtype=jnp.float32),
            "gs": jnp.ones((planes,), jnp.float32),
            "bs": jnp.zeros((planes,), jnp.float32),
        }

    key = jax.random.PRNGKey(0)
    kx1, kp1, kx2, kp2 = jax.random.split(key, 4)

    # Case 1: downsampling block (stride=2, projection shortcut path).
    N, cin, H, W, planes, stride = 2, 4, 16, 16, 8, 2
    x1 = jax.random.normal(kx1, (N, cin, H, W), jnp.float32)
    p1 = make_params(kp1, cin, planes)
    out1 = jax.block_until_ready(basic_block_forward(x1, p1, stride))
    ref1 = jax.block_until_ready(_ref_forward(x1, p1, stride))
    assert out1.shape == (N, planes, H // stride, W // stride), out1.shape
    # bf16 MXU operands / bf16 inter-stage activations vs. all-f32 reference.
    assert jnp.allclose(out1, ref1, rtol=5e-2, atol=5e-2), \
        f"proj path max err {jnp.max(jnp.abs(out1 - ref1))}"

    # Case 2: identity block (stride=1, cin == planes, identity shortcut path).
    N2, cin2, H2, W2, planes2, stride2 = 2, 8, 16, 16, 8, 1
    x2 = jax.random.normal(kx2, (N2, cin2, H2, W2), jnp.float32)
    p2 = make_params(kp2, cin2, planes2)
    out2 = jax.block_until_ready(basic_block_forward(x2, p2, stride2))
    ref2 = jax.block_until_ready(_ref_forward(x2, p2, stride2))
    assert out2.shape == (N2, planes2, H2, W2), out2.shape
    assert jnp.allclose(out2, ref2, rtol=5e-2, atol=5e-2), \
        f"identity path max err {jnp.max(jnp.abs(out2 - ref2))}"

    print("KERNEL_OK")
</pallas_src>

<mosaic_0001>
module attributes {stable_mosaic.version = 11 : i64} {
  func.func @_conv1_proj_kernel(%arg0: i32, %arg1: memref<64x36xbf16, #tpu.memory_space<vmem>>, %arg2: memref<36x8xbf16, #tpu.memory_space<vmem>>, %arg3: memref<4x8xbf16, #tpu.memory_space<vmem>>, %arg4: memref<64x8xbf16, #tpu.memory_space<vmem>>, %arg5: memref<64x8xbf16, #tpu.memory_space<vmem>>, %arg6: memref<1x4x8xf32, #tpu.memory_space<vmem>>) attributes {dimension_semantics = [#tpu.dimension_semantics<parallel>], iteration_bounds = array<i64: 2>, scalar_prefetch = 0 : i64, scratch_operands = 0 : i64, tpu.core_type = #tpu.core_type<tc>, window_params = [{transform_indices = @transform_0, window_bounds = array<i64: 64, 36>}, {pipeline_mode = #tpu.pipeline_mode<synchronous>, transform_indices = @transform_1, window_bounds = array<i64: 36, 8>}, {pipeline_mode = #tpu.pipeline_mode<synchronous>, transform_indices = @transform_2, window_bounds = array<i64: 4, 8>}, {transform_indices = @transform_3, window_bounds = array<i64: 64, 8>}, {transform_indices = @transform_4, window_bounds = array<i64: 64, 8>}, {transform_indices = @transform_5, window_bounds = array<i64: 1, 4, 8>}]} {
    %c0 = arith.constant 0 : index
    %c0_0 = arith.constant 0 : index
    %0 = vector.load %arg1[%c0, %c0_0] : memref<64x36xbf16, #tpu.memory_space<vmem>>, vector<64x36xbf16>
    %c0_1 = arith.constant 0 : index
    %c0_2 = arith.constant 0 : index
    %1 = vector.load %arg2[%c0_1, %c0_2] : memref<36x8xbf16, #tpu.memory_space<vmem>>, vector<36x8xbf16>
    %cst = arith.constant dense<0.000000e+00> : vector<64x8xf32>
    %2 = tpu.matmul %0, %1, %cst {dimension_numbers = #tpu.dot_dimension_numbers<[1], [0], [0], [1], [0, 0, 1, 1], [], []>} : vector<64x36xbf16>, vector<36x8xbf16>, vector<64x8xf32> -> vector<64x8xf32>
    %3 = vector.extract_strided_slice %0 {offsets = [0, 16], sizes = [64, 4], strides = [1, 1]} : vector<64x36xbf16> to vector<64x4xbf16>
    %c0_3 = arith.constant 0 : index
    %c0_4 = arith.constant 0 : index
    %4 = vector.load %arg3[%c0_3, %c0_4] : memref<4x8xbf16, #tpu.memory_space<vmem>>, vector<4x8xbf16>
    %cst_5 = arith.constant dense<0.000000e+00> : vector<64x8xf32>
    %5 = tpu.matmul %3, %4, %cst_5 {dimension_numbers = #tpu.dot_dimension_numbers<[1], [0], [0], [1], [0, 0, 1, 1], [], []>} : vector<64x4xbf16>, vector<4x8xbf16>, vector<64x8xf32> -> vector<64x8xf32>
    %cst_6 = arith.constant dense<0.000000e+00> : vector<8xf32>
    %6 = vector.multi_reduction <add>, %2, %cst_6 [0] : vector<64x8xf32> to vector<8xf32>
    %7 = vector.shape_cast %6 : vector<8xf32> to vector<1x8xf32>
    %8 = arith.mulf %2, %2 : vector<64x8xf32>
    %cst_7 = arith.constant dense<0.000000e+00> : vector<8xf32>
    %9 = vector.multi_reduction <add>, %8, %cst_7 [0] : vector<64x8xf32> to vector<8xf32>
    %10 = vector.shape_cast %9 : vector<8xf32> to vector<1x8xf32>
    %cst_8 = arith.constant dense<0.000000e+00> : vector<8xf32>
    %11 = vector.multi_reduction <add>, %5, %cst_8 [0] : vector<64x8xf32> to vector<8xf32>
    %12 = vector.shape_cast %11 : vector<8xf32> to vector<1x8xf32>
    %13 = arith.mulf %5, %5 : vector<64x8xf32>
    %cst_9 = arith.constant dense<0.000000e+00> : vector<8xf32>
    %14 = vector.multi_reduction <add>, %13, %cst_9 [0] : vector<64x8xf32> to vector<8xf32>
    %15 = vector.shape_cast %14 : vector<8xf32> to vector<1x8xf32>
    %16 = tpu.concatenate %7, %10, %12, %15 in 0 : vector<1x8xf32>, vector<1x8xf32>, vector<1x8xf32>, vector<1x8xf32> -> vector<4x8xf32>
    %17 = vector.shape_cast %16 : vector<4x8xf32> to vector<1x4x8xf32>
    %c0_10 = arith.constant 0 : index
    %c0_11 = arith.constant 0 : index
    %c0_12 = arith.constant 0 : index
    %18 = vector.load %arg6[%c0_10, %c0_11, %c0_12] : memref<1x4x8xf32, #tpu.memory_space<vmem>>, vector<1x4x8xf32>
    tpu.vector_store %arg6[%c0_10, %c0_11, %c0_12], %17 {strides = array<i32>} : memref<1x4x8xf32, #tpu.memory_space<vmem>>, vector<1x4x8xf32>,
    %19 = arith.truncf %2 : vector<64x8xf32> to vector<64x8xbf16>
    %c0_13 = arith.constant 0 : index
    %c0_14 = arith.constant 0 : index
    %20 = vector.load %arg4[%c0_13, %c0_14] : memref<64x8xbf16, #tpu.memory_space<vmem>>, vector<64x8xbf16>
    tpu.vector_store %arg4[%c0_13, %c0_14], %19 {strides = array<i32>} : memref<64x8xbf16, #tpu.memory_space<vmem>>, vector<64x8xbf16>,
    %21 = arith.truncf %5 : vector<64x8xf32> to vector<64x8xbf16>
    %c0_15 = arith.constant 0 : index
    %c0_16 = arith.constant 0 : index
    %22 = vector.load %arg5[%c0_15, %c0_16] : memref<64x8xbf16, #tpu.memory_space<vmem>>, vector<64x8xbf16>
    tpu.vector_store %arg5[%c0_15, %c0_16], %21 {strides = array<i32>} : memref<64x8xbf16, #tpu.memory_space<vmem>>, vector<64x8xbf16>,
    return
  }
  func.func @transform_0(%arg0: i32) -> (i32, i32) {
    %c0_i32 = arith.constant 0 : i32
    %c0_i32_0 = arith.constant 0 : i32
    return %arg0, %c0_i32 : i32, i32
  }
  func.func @transform_1(%arg0: i32) -> (i32, i32) {
    %c0_i32 = arith.constant 0 : i32
    %c0_i32_0 = arith.constant 0 : i32
    %c0_i32_1 = arith.constant 0 : i32
    return %c0_i32, %c0_i32_0 : i32, i32
  }
  func.func @transform_2(%arg0: i32) -> (i32, i32) {
    %c0_i32 = arith.constant 0 : i32
    %c0_i32_0 = arith.constant 0 : i32
    %c0_i32_1 = arith.constant 0 : i32
    return %c0_i32, %c0_i32_0 : i32, i32
  }
  func.func @transform_3(%arg0: i32) -> (i32, i32) {
    %c0_i32 = arith.constant 0 : i32
    %c0_i32_0 = arith.constant 0 : i32
    return %arg0, %c0_i32 : i32, i32
  }
  func.func @transform_4(%arg0: i32) -> (i32, i32) {
    %c0_i32 = arith.constant 0 : i32
    %c0_i32_0 = arith.constant 0 : i32
    return %arg0, %c0_i32 : i32, i32
  }
  func.func @transform_5(%arg0: i32) -> (i32, i32, i32) {
    %c0_i32 = arith.constant 0 : i32
    %c0_i32_0 = arith.constant 0 : i32
    %c0_i32_1 = arith.constant 0 : i32
    return %arg0, %c0_i32, %c0_i32_0 : i32, i32, i32
  }
}

</mosaic_0001>

<bundles_post_ra>
// kernel: tpu_custom_call.1
= control target key start
LH: loop header
LB: loop body
LE: loop exit
PB: predicated region body
PF: predicated region fallthrough
CT: control target
= control target key end

     0   :  { %11 = vsyncpa [#allocation3], 0  ;;  %s1062_s0 = inlined_call_operand.vmem [shape: bf16[128,36], index: 0, kind: input, shape index: {}]   ;;  %s1063_s1 = inlined_call_operand.vmem [shape: bf16[36,8], index: 1, kind: input, shape index: {}]   ;;  %s1064_s2 = inlined_call_operand.vmem [shape: bf16[4,8], index: 2, kind: input, shape index: {}]   ;;  %s1065_s3 = inlined_call_operand.vmem [shape: bf16[128,8], index: 3, kind: output, shape index: {0}]   ;;  %s1066_s4 = inlined_call_operand.vmem [shape: bf16[128,8], index: 4, kind: output, shape index: {1}]   ;;  %s1067_s5 = inlined_call_operand.hbm [shape: f32[2,4,8], index: 5, kind: output, shape index: {2}]  }
   0x1   :  { %13 = vsyncpa [#allocation3 + $0x1], 0  ;;  %s876_s18 = smov 0   ;;  %s878_s19 = smov 0  }
   0x2   :  { %s880_s20 = smov 0   ;;  %s882_s21 = smov 0  }
   0x3 LB: > { %s897_s22 = sadd.s32 4294967295, %s843_s21   ;;  %s684_s23 = sadd.s32 4294967294, %s843_s21   ;;  %s843_s21 = sphi %s882_s21, %s1073_s21   ;;  %s839_s20 = sphi %s880_s20, %s1072_s20   ;;  %s835_s19 = sphi %s878_s19, %s1071_s19   ;;  %s831_s18 = sphi %s876_s18, %s1070_s18  }
   0x4   : > { %s901_s24 = sadd.s32 1, %s843_s21   ;;  %s146_s25 = sadd.s32 1, %s839_s20 }
   0x5   : > { %s143_s26 = ssub.s32 %s843_s21, %s901_s24  ;;  %p156_p0 = scmp.ne.s32.totalorder %s839_s20, %s835_s19 }
   0x6   : > { %p144_p1 = scmp.eq.s32.totalorder %s143_s26, 0  ;;  %p157_p2 = scmp.eq.s32.totalorder %s897_s22, 1 }
   0x7   : > { %p162_p3 = scmp.ne.s32.totalorder %s835_s19, %s831_s18  ;;  %p163_p4 = scmp.eq.s32.totalorder %s684_s23, 1 }
   0x8   : > { %s912_s27 = scalar_select %p144_p1, %s839_s20, %s146_s25  }
   0x9   : > { %p914_p5 = por %p157_p2, %p156_p0  ;;  %p918_p6 = por %p163_p4, %p162_p3 }
   0xa   : > { %p687_p7 = scmp.ge.s32.totalorder %s843_s21, 1  ;;  %p196_p8 = scmp.lt.s32.totalorder %s843_s21, 3 }
   0xc   : > { %p197_p9 = pnand %p687_p7, %p196_p8 }
   0xd   : > { %s689_s30 = sshll.u32 (!%p197_p9), %s897_s22, 3  ;;  %s845_s16 = smov (!%p197_p9), 112  }
   0xe   : > { %200 = sbr.rel (%p197_p9) target bundleno = 331 (0x14b), region = 32  ;;  %p235_p10 = scmp.lt.s32.totalorder (!%p197_p9), %s689_s30, 15 }
   0xf   : > { %s231_s9 = sand.u32 (!%p197_p9), 1, %s835_s19   ;;  %s728_s11 = sshll.u32 (!%p197_p9), %s897_s22, 2 }
  0x10   : > { %s570_s14 = scalar_lea.hbm (!%p197_p9), %s1067_s5, %s728_s11  ;;  %s552_s22 = scalar_lea.sflag (!%p197_p9), [#allocation3], %s231_s9 }
  0x11   : > { %s574_s17 = sshll.u32 (!%p197_p9), %s570_s14, 4  ;;  %s801_s6 = scalar_lea.hbm (!%p197_p9), %s1067_s5, 8  ;;  %s575_s17 = int_to_ptr.hbm [resolvable:$true] %s574_s17 }
  0x12   : > { %s795_s23 = sshra.s32 (!%p197_p9), %s575_s17, 4  ;;  %s796_s23 = int_to_ptr.hbm [resolvable:$true] %s795_s23 }
  0x13   : > { %v265_v0 = vld [vmem:[%s1063_s1 + $0x10] sm:$0x3]  ;;  %vm314_vm0 = vcmask 1041408   ;;  %v347_v2 = vld [vmem:[%s1064_s2] sm:$0x3]  ;;  %s1075_s30 = smov (!%p235_p10, %s689_s30), 15  ;;  %p802_p0 = scmp.lt.s32.totalorder %s796_s23, %s1067_s5 }
  0x14   : > { %v295_v1 = vunpack.c.l.b16 %v265_v0  ;;  %v370_v3 = vsel %vm314_vm0, %v347_v2, 0  ;;  %s932_s10 = sshll.u32 %s1075_s30, 2  ;;  %v736_v6 = vld [vmem:[%s1063_s1 + $0x8] sm:$0xff]  ;;  %v735_v9 = vld [vmem:[%s1063_s1] sm:$0xff]  ;;  %vm301_vm1 = vcmask 293888   ;;  %vm356_vm2 = vcmask 31744  }
  0x15   : > { %379 = vmatpush.bf16.msra.mxu1 %v370_v3  ;;  %740 = vmatpush.bf16.msra.mxu3 %v370_v3  ;;  %s238_s13 = scalar_lea.vmem %s1062_s0, %s932_s10  ;;  %s952_s30 = scalar_lea.vmem %s1065_s3, %s932_s10  ;;  %vm507_vm3 = vcmask 60416   ;;  %vm401_vm4 = vcmask 64512   ;;  %vm502_vm5 = vcmask 1040384   ;;  %vm505_vm6 = vcmask 1042432  }
  0x16   : > { %v298_v4 = vpack.c.b16 %v295_v1, %v295_v1  ;;  %v732_v7 = vld [vmem:[%s238_s13 + $0x8] sm:$0xff]  ;;  %v731_v8 = vld [vmem:[%s238_s13] sm:$0xff]  ;;  %v733_v10 = vld [vmem:[%s238_s13 + $0x10] sm:$0xff]  ;;  %s991_s8 = scalar_lea.vmem %s1066_s4, %s932_s10  ;;  %s688_s10 = sshll.u32 %s231_s9, 2 }
  0x17   : > { %350 = vrot.lane.b32.xlu0 %v732_v7, %s845_s16  ;;  %348 = vrot.lane.b32.xlu1 %v731_v8, %s845_s16  ;;  %v734_v11 = vld [vmem:[%s238_s13 + $0x18] sm:$0xff]  ;;  %s233_s15 = scalar_lea.vmem [#allocation2], %s688_s10  ;;  %s797_s25 = scalar_lea.hbm %s796_s23, 4 }
  0x18   : > { %v316_v5 = vsel %vm314_vm0, %v298_v4, 0  ;;  %p798_p11 = scmp.ne.s32.totalorder %s796_s23, %s797_s25  ;;  %p803_p1 = scmp.lt.s32.totalorder %s801_s6, %s797_s25 }
  0x19   : > { %323 = vmatpush.bf16.msra.mxu0 %v316_v5  ;;  %737 = vmatpush.bf16.msra.mxu2 %v316_v5 }
  0x1a   : > { %p799_p12 = pnand %p798_p11, %p914_p5  ;;  %p804_p2 = por %p803_p1, %p802_p0 }
  0x1c   : > { %p800_p13 = pneg %p799_p12 }
  0x1d   : > { %324 = vmatpush.bf16.msra.mxu0 %v736_v6  ;;  %738 = vmatpush.bf16.msra.mxu2 %v736_v6 }
  0x1e   : > { %p805_p3 = pnand %p804_p2, %p800_p13 }
  0x1f   : > { %352 = vrot.lane.b32.xlu0 %v733_v10, %s845_s16  ;;  %354 = vrot.lane.b32.xlu1 %v734_v11, %s845_s16  ;;  %s572_s16 = sshll.u32 %s233_s15, 4  ;;  %s573_s16 = int_to_ptr.vmem [resolvable:$true] %s572_s16 }
  0x21   : > { %325 = vmatpush.bf16.msra.mxu0 %v735_v9  ;;  %739 = vmatpush.bf16.msra.mxu2 %v735_v9 }
  0x24   : > { %719 = vmatmul.msk.bf16.vlgmr.msra.gmra.mxu0 %vm301_vm1, %v731_v8  ;;  %721 = vmatmul.msk.bf16.vlgmr.msra.gmra.mxu2 %vm301_vm1, %v733_v10 }
  0x34   : > { %720 = vmatmul.msk.bf16.gmra.mxu0 %vm301_vm1, %v732_v7  ;;  %722 = vmatmul.msk.bf16.gmra.mxu2 %vm301_vm1, %v734_v11 }
  0x89   : > { %v351_v12 = vpop.permute.xlu0 %350  ;;  %v349_v13 = vpop.permute.xlu1 %348 }
  0x8a   : > { %723 = vmatmul.msk.bf16.vlgmr.msra.gmra.mxu1 %vm356_vm2, %v349_v13  ;;  %724 = vmatmul.msk.bf16.vlgmr.msra.gmra.mxu3 %vm356_vm2, %v351_v12 }
  0x91   : > { %v353_v14 = vpop.permute.xlu0 %352  ;;  %v355_v26 = vpop.permute.xlu1 %354 }
  0x9a   : > { %725 = vmatmul.msk.bf16.gmra.mxu3 %vm356_vm2, %v353_v14 }
  0xa1   : > { %v327_v15 = vpop.f32.mrf.mxu0 }
  0xa2   : > { %v509_v16 = vpack.c.bf16 %v327_v15, %v327_v15  ;;  %v423_v17 = vmul.f32 %v327_v15, %v327_v15  ;;  %v402_v19 = vsel %vm401_vm4, %v327_v15, 0.0 }
  0xa4   : > { %517 = vst.msk [vmem:[%s952_s30] sm:$0xf] %vm507_vm3, %v509_v16  ;;  %v431_v22 = vsel %vm401_vm4, %v423_v17, 0.0 }
  0xa7   : > { %v337_v18 = vpop.f32.mrf.mxu2 }
  0xa8   : > { %v513_v20 = vpack.c.bf16 %v337_v18, %v337_v18  ;;  %v427_v38 = vmul.f32 %v337_v18, %v337_v18  ;;  %v409_v39 = vsel %vm401_vm4, %v337_v18, 0.0 }
  0xa9   : > { %v329_v21 = vpop.f32.mrf.mxu0 }
  0xaa   : > { %v403_v23 = vsel %vm401_vm4, %v329_v21, 0.0  ;;  %v424_v24 = vmul.f32 %v329_v21, %v329_v21  ;;  %v510_v25 = vpack.c.bf16 %v329_v21, %v329_v21  ;;  %521 = vst.msk [vmem:[%s952_s30 + $0x10] sm:$0xf] %vm507_vm3, %v513_v20  ;;  %726 = vmatmul.msk.bf16.gmra.mxu3 %vm356_vm2, %v355_v26  ;;  %v438_v49 = vsel %vm401_vm4, %v427_v38, 0.0 }
  0xab   : > { %v404_v27 = vadd.f32 %v403_v23, %v402_v19 }
  0xac   : > { %v432_v28 = vsel %vm401_vm4, %v424_v24, 0.0  ;;  %518 = vst.msk [vmem:[%s952_s30 + $0x4] sm:$0xf] %vm507_vm3, %v510_v25 }
  0xad   : > { %v433_v29 = vadd.f32 %v432_v28, %v431_v22 }
  0xaf   : > { %v339_v30 = vpop.f32.mrf.mxu2 }
  0xb0   : > { %v514_v31 = vpack.c.bf16 %v339_v30, %v339_v30  ;;  %v428_v43 = vmul.f32 %v339_v30, %v339_v30  ;;  %v411_v50 = vsel %vm401_vm4, %v339_v30, 0.0 }
  0xb1   : > { %v332_v32 = vpop.f32.mrf.mxu0 }
  0xb2   : > { %v511_v33 = vpack.c.bf16 %v332_v32, %v332_v32  ;;  %522 = vst.msk [vmem:[%s952_s30 + $0x14] sm:$0xf] %vm507_vm3, %v514_v31  ;;  %v425_v34 = vmul.f32 %v332_v32, %v332_v32  ;;  %v405_v35 = vsel %vm401_vm4, %v332_v32, 0.0  ;;  %v440_v55 = vsel %vm401_vm4, %v428_v43, 0.0 }
  0xb3   : > { %v406_v37 = vadd.f32 %v405_v35, %v404_v27 }
  0xb4   : > { %519 = vst.msk [vmem:[%s952_s30 + $0x8] sm:$0xf] %vm507_vm3, %v511_v33  ;;  %v434_v36 = vsel %vm401_vm4, %v425_v34, 0.0 }
  0xb5   : > { %v435_v40 = vadd.f32 %v434_v36, %v433_v29 }
  0xb7   : > { %v342_v42 = vpop.f32.mrf.mxu2 }
  0xb8   : > { %v515_v48 = vpack.c.bf16 %v342_v42, %v342_v42  ;;  %v429_v52 = vmul.f32 %v342_v42, %v342_v42  ;;  %v413_v56 = vsel %vm401_vm4, %v342_v42, 0.0 }
  0xb9   : > { %v334_v41 = vpop.f32.mrf.mxu0 }
  0xba   : > { %v407_v44 = vsel %vm401_vm4, %v334_v41, 0.0  ;;  %v426_v45 = vmul.f32 %v334_v41, %v334_v41  ;;  %v512_v46 = vpack.c.bf16 %v334_v41, %v334_v41  ;;  %523 = vst.msk [vmem:[%s952_s30 + $0x18] sm:$0xf] %vm507_vm3, %v515_v48  ;;  %v442_v59 = vsel %vm401_vm4, %v429_v52, 0.0 }
  0xbb   : > { %v408_v47 = vadd.f32 %v407_v44, %v406_v37 }
  0xbc   : > { %v436_v51 = vsel %vm401_vm4, %v426_v45, 0.0  ;;  %520 = vst.msk [vmem:[%s952_s30 + $0xc] sm:$0xf] %vm507_vm3, %v512_v46 }
  0xbd   : > { %v410_v53 = vadd.f32 %v409_v39, %v408_v47  ;;  %v437_v54 = vadd.f32 %v436_v51, %v435_v40 }
  0xbf   : > { %v439_v57 = vadd.f32 %v438_v49, %v437_v54  ;;  %v412_v58 = vadd.f32 %v411_v50, %v410_v53  ;;  %v344_v62 = vpop.f32.mrf.mxu2 }
  0xc0   : > { %v430_v63 = vmul.f32 %v344_v62, %v344_v62  ;;  %v415_v1 = vsel %vm401_vm4, %v344_v62, 0.0  ;;  %v516_v2 = vpack.c.bf16 %v344_v62, %v344_v62 }
  0xc1   : > { %v414_v60 = vadd.f32 %v413_v56, %v412_v58  ;;  %v441_v61 = vadd.f32 %v440_v55, %v439_v57 }
  0xc2   : > { %v444_v4 = vsel %vm401_vm4, %v430_v63, 0.0  ;;  %524 = vst.msk [vmem:[%s952_s30 + $0x1c] sm:$0xf] %vm507_vm3, %v516_v2 }
  0xc3   : > { %v443_v0 = vadd.f32 %v442_v59, %v441_v61  ;;  %v416_v3 = vadd.f32 %v415_v1, %v414_v60 }
  0xc5   : > { %v445_v5 = vadd.f32 %v444_v4, %v443_v0  ;;  %v417_v6 = vrot.slane %v416_v3, 4 }
  0xc7   : > { %v446_v7 = vrot.slane %v445_v5, 4  ;;  %v418_v8 = vadd.f32 %v417_v6, %v416_v3 }
  0xc9   : > { %v447_v9 = vadd.f32 %v446_v7, %v445_v5  ;;  %v419_v10 = vrot.slane %v418_v8, 2 }
  0xcb   : > { %v448_v11 = vrot.slane %v447_v9, 2  ;;  %v420_v12 = vadd.f32 %v419_v10, %v418_v8 }
  0xcd   : > { %v449_v13 = vadd.f32 %v448_v11, %v447_v9  ;;  %v421_v14 = vrot.slane %v420_v12, 1 }
  0xcf   : > { %v450_v15 = vrot.slane %v449_v13, 1  ;;  %v422_v16 = vadd.f32 %v421_v14, %v420_v12 }
  0xd1   : > { %v451_v18 = vadd.f32 %v450_v15, %v449_v13 }
  0xd3   : > { %v993_v20 = vsel %vm502_vm5, %v422_v16, %v451_v18 }
 0x107   : > { %v381_v17 = vpop.f32.mrf.mxu1 }
 0x108   : > { %v525_v19 = vpack.c.bf16 %v381_v17, %v381_v17  ;;  %v473_v29 = vmul.f32 %v381_v17, %v381_v17  ;;  %v452_v32 = vsel %vm401_vm4, %v381_v17, 0.0 }
 0x10a   : > { %533 = vst.msk [vmem:[%s991_s8] sm:$0xf] %vm507_vm3, %v525_v19  ;;  %v481_v35 = vsel %vm401_vm4, %v473_v29, 0.0 }
 0x10d   : > { %v386_v21 = vpop.f32.mrf.mxu3 }
 0x10e   : > { %v527_v22 = vpack.c.bf16 %v386_v21, %v386_v21  ;;  %v475_v37 = vmul.f32 %v386_v21, %v386_v21  ;;  %v455_v41 = vsel %vm401_vm4, %v386_v21, 0.0 }
 0x10f   : > { %v383_v23 = vpop.f32.mrf.mxu1 }
 0x110   : > { %535 = vst.msk [vmem:[%s991_s8 + $0x8] sm:$0xf] %vm507_vm3, %v527_v22  ;;  %v526_v24 = vpack.c.bf16 %v383_v23, %v383_v23  ;;  %v474_v30 = vmul.f32 %v383_v23, %v383_v23  ;;  %v453_v33 = vsel %vm401_vm4, %v383_v23, 0.0  ;;  %v484_v44 = vsel %vm401_vm4, %v475_v37, 0.0 }
 0x111   : > { %v454_v38 = vadd.f32 %v453_v33, %v452_v32 }
 0x112   : > { %534 = vst.msk [vmem:[%s991_s8 + $0x4] sm:$0xf] %vm507_vm3, %v526_v24  ;;  %v482_v36 = vsel %vm401_vm4, %v474_v30, 0.0 }
 0x113   : > { %v483_v40 = vadd.f32 %v482_v36, %v481_v35  ;;  %v456_v45 = vadd.f32 %v455_v41, %v454_v38 }
 0x115   : > { %v388_v25 = vpop.f32.mrf.mxu3  ;;  %v485_v51 = vadd.f32 %v484_v44, %v483_v40 }
 0x116   : > { %v528_v26 = vpack.c.bf16 %v388_v25, %v388_v25  ;;  %v476_v39 = vmul.f32 %v388_v25, %v388_v25  ;;  %v457_v42 = vsel %vm401_vm4, %v388_v25, 0.0 }
 0x117   : > { %v458_v52 = vadd.f32 %v457_v42, %v456_v45 }
 0x118   : > { %536 = vst.msk [vmem:[%s991_s8 + $0xc] sm:$0xf] %vm507_vm3, %v528_v26  ;;  %v486_v47 = vsel %vm401_vm4, %v476_v39, 0.0 }
 0x119   : > { %v487_v56 = vadd.f32 %v486_v47, %v485_v51 }
 0x11d   : > { %v391_v27 = vpop.f32.mrf.mxu3 }
 0x11e   : > { %v529_v28 = vpack.c.bf16 %v391_v27, %v391_v27  ;;  %v477_v43 = vmul.f32 %v391_v27, %v391_v27  ;;  %v459_v48 = vsel %vm401_vm4, %v391_v27, 0.0 }
 0x11f   : > { %v460_v57 = vadd.f32 %v459_v48, %v458_v52 }
 0x120   : > { %537 = vst.msk [vmem:[%s991_s8 + $0x10] sm:$0xf] %vm507_vm3, %v529_v28  ;;  %v488_v53 = vsel %vm401_vm4, %v477_v43, 0.0 }
 0x121   : > { %v489_v60 = vadd.f32 %v488_v53, %v487_v56 }
 0x125   : > { %v393_v31 = vpop.f32.mrf.mxu3 }
 0x126   : > { %v530_v34 = vpack.c.bf16 %v393_v31, %v393_v31  ;;  %v478_v49 = vmul.f32 %v393_v31, %v393_v31  ;;  %v461_v54 = vsel %vm401_vm4, %v393_v31, 0.0 }
 0x127   : > { %v462_v61 = vadd.f32 %v461_v54, %v460_v57 }
 0x128   : > { %538 = vst.msk [vmem:[%s991_s8 + $0x14] sm:$0xf] %vm507_vm3, %v530_v34  ;;  %v490_v58 = vsel %vm401_vm4, %v478_v49, 0.0 }
 0x129   : > { %v491_v63 = vadd.f32 %v490_v58, %v489_v60 }
 0x12d   : > { %v396_v46 = vpop.f32.mrf.mxu3 }
 0x12e   : > { %v531_v50 = vpack.c.bf16 %v396_v46, %v396_v46  ;;  %v479_v55 = vmul.f32 %v396_v46, %v396_v46  ;;  %v463_v59 = vsel %vm401_vm4, %v396_v46, 0.0 }
 0x12f   : > { %v464_v0 = vadd.f32 %v463_v59, %v462_v61 }
 0x130   : > { %539 = vst.msk [vmem:[%s991_s8 + $0x18] sm:$0xf] %vm507_vm3, %v531_v50  ;;  %v492_v62 = vsel %vm401_vm4, %v479_v55, 0.0 }
 0x131   : > { %v493_v5 = vadd.f32 %v492_v62, %v491_v63 }
 0x135   : > { %v398_v1 = vpop.f32.mrf.mxu3 }
 0x136   : > { %v465_v2 = vsel %vm401_vm4, %v398_v1, 0.0  ;;  %v480_v3 = vmul.f32 %v398_v1, %v398_v1  ;;  %v532_v4 = vpack.c.bf16 %v398_v1, %v398_v1 }
 0x137   : > { %v466_v6 = vadd.f32 %v465_v2, %v464_v0 }
 0x138   : > { %v494_v7 = vsel %vm401_vm4, %v480_v3, 0.0  ;;  %540 = vst.msk [vmem:[%s991_s8 + $0x1c] sm:$0xf] %vm507_vm3, %v532_v4 }
 0x139   : > { %v467_v8 = vrot.slane %v466_v6, 4  ;;  %v495_v9 = vadd.f32 %v494_v7, %v493_v5 }
 0x13b   : > { %v468_v10 = vadd.f32 %v467_v8, %v466_v6  ;;  %v496_v11 = vrot.slane %v495_v9, 4 }
 0x13d   : > { %v469_v12 = vrot.slane %v468_v10, 2  ;;  %v497_v13 = vadd.f32 %v496_v11, %v495_v9 }
 0x13f   : > { %v470_v14 = vadd.f32 %v469_v12, %v468_v10  ;;  %v498_v15 = vrot.slane %v497_v13, 2 }
 0x141   : > { %v471_v16 = vrot.slane %v470_v14, 1  ;;  %v499_v17 = vadd.f32 %v498_v15, %v497_v13 }
 0x143   : > { %v472_v18 = vadd.f32 %v471_v16, %v470_v14  ;;  %v500_v19 = vrot.slane %v499_v17, 1 }
 0x145   : > { %v501_v21 = vadd.f32 %v500_v19, %v499_v17  ;;  %v504_v22 = vsel %vm314_vm0, %v993_v20, %v472_v18 }
 0x147   : > { %v506_v23 = vsel %vm505_vm6, %v504_v22, %v501_v21 }
 0x148   : > { %508 = vst.msk [vmem:[%s233_s15] sm:$0xf] %vm507_vm3, %v506_v23 }
 0x149   : > { %808 = shalt.err (!%p805_p3)
}
 0x14a   : > { %741 = dma.vmem_to_hbm [thread:$0]  (%p914_p5), %s573_s16, 64, %s575_s17, %s552_s22  }
 0x14b PF: > { %p747_p4 = scmp.ge.s32.totalorder %s843_s21, 2  ;;  %s602_s9 = sand.u32 1, %s831_s18  }
 0x14c   : > { %s603_s10 = scalar_lea.sflag [#allocation3], %s602_s9 }
 0x14d   : > { %p744_p7 = pnand %p747_p4, %p918_p6 }
 0x14f   : > { %p745_p8 = pneg %p744_p7 }
 0x151   : > { %826 = dma.done.wait (%p745_p8), %s603_s10, 64  }
 0x152   : > { %828 = vsyncadd (%p745_p8), %s603_s10, 4294967232  ;;  %p16_p9 = scmp.ge.s32.totalorder %s901_s24, 4   ;;  %s1070_s18 = smov %s835_s19 }
 0x153   : > { %s1071_s19 = smov %s839_s20  ;;  %s1072_s20 = smov %s912_s27 }
 0x154   : > { %s1073_s21 = smov %s901_s24  ;;  %18 = sbr.rel (!%p16_p9) target bundleno = 3 (0x3), region = 91 }
 0x159   :  { %609 = vsyncpa [#allocation3], 1 }
 0x15a   :  { %611 = vsyncpa [#allocation3 + $0x1], 1 }

</bundles_post_ra>
